<compile_context>
chip_gen: v6e
topology: v6e:2x2x1
jax: 0.10.0
libtpu: 0.0.40
codegen_flags: <defaults>
</compile_context>

<pallas_src>
import numpy as np
import jax
import jax.numpy as jnp
from jax import lax
from jax.experimental import pallas as pl
from jax.experimental.pallas import tpu as pltpu


def _round_up(x, m):
    return (x + m - 1) // m * m


def features_embedding(x, offsets, table, *, block_b=1024):
    """Pallas equivalent of FeaturesEmbedding.forward.

    x       : (B, F) int32   per-field category ids
    offsets : (F,)   int32   cumulative field offsets
    table   : (V, E) float32 shared embedding table
    returns : (B, F, E) float32
    """
    B, F = x.shape
    V, E = table.shape
    FV, FE = F * V, F * E
    assert offsets.shape == (F,)
    assert block_b % 8 == 0, "batch tile must be a multiple of 8 sublanes"

    # Batch tile: large (amortize per-step pipeline overhead), sublane-aligned,
    # capped so the grid has at least 2 steps (v7x has 2 TensorCores to shard
    # the "parallel" axis over).
    Bp8 = _round_up(B, 8)
    TB = max(8, min(block_b, _round_up(pl.cdiv(Bp8, 2), 8)))
    Bp = _round_up(B, TB)

    xp = x.astype(jnp.int32)
    if Bp != B:
        # Padded rows use id 0 (always valid); they are removed by the [:B] slice.
        xp = jnp.pad(xp, ((0, Bp - B), (0, 0)))

    # shift[f] = offsets[f] + f*V, so one in-kernel add yields the fused-one-hot
    # target column directly.
    shift = (offsets.astype(jnp.int32)
             + jnp.arange(F, dtype=jnp.int32) * V).reshape(1, F)

    # Block-diagonal RHS: diag block f = table.  Shape (F*V, F*E), e.g. (96, 128).
    w = jnp.kron(jnp.eye(F, dtype=table.dtype), table)

    def kernel(x_ref, shift_ref, w_ref, out_ref):
        # targets[b, f] = x[b, f] + offsets[f] + f*V   (single VPU add)
        tgt = x_ref[...] + shift_ref[...]                        # (TB, F) int32
        lane = lax.broadcasted_iota(jnp.int32, (TB, FV), 1)      # fused-one-hot lanes
        hit = lane == tgt[:, 0:1]
        for f in range(1, F):                                    # static, tiny F
            hit = jnp.logical_or(hit, lane == tgt[:, f:f + 1])   # disjoint hits
        onehot = hit.astype(jnp.float32)                         # exact 0/1, (TB, FV)
        # One (TB, FV) x (FV, FE) MXU matmul -> lane-dense (TB, FE) tile;
        # HIGHEST precision keeps the f32 gather bit-exact for arbitrary tables.
        out_ref[...] = jnp.dot(
            onehot, w_ref[...],
            preferred_element_type=jnp.float32,
            precision=jax.lax.Precision.HIGHEST,
        ).astype(out_ref.dtype)

    grid_spec = pltpu.PrefetchScalarGridSpec(
        num_scalar_prefetch=0,
        grid=(Bp // TB,),
        in_specs=[
            pl.BlockSpec((TB, F), lambda i: (i, 0)),             # indices tile
            pl.BlockSpec((1, F), lambda i: (0, 0),               # shift (resident)
                         pipeline_mode=pl.Buffered(1)),
            pl.BlockSpec((FV, FE), lambda i: (0, 0),             # block-diag weights
                         pipeline_mode=pl.Buffered(1)),          #   (resident)
        ],
        out_specs=pl.BlockSpec((TB, FE), lambda i: (i, 0)),
    )

    out2d = pl.pallas_call(
        kernel,
        out_shape=jax.ShapeDtypeStruct((Bp, FE), table.dtype),
        grid_spec=grid_spec,
        compiler_params=pltpu.CompilerParams(
            dimension_semantics=("parallel",),                   # shard tiles on v7x
            vmem_limit_bytes=32 * 1024 * 1024),
        cost_estimate=pl.CostEstimate(
            flops=2 * Bp * FV * FE,
            transcendentals=0,
            bytes_accessed=(Bp * F * 4) + (FV * FE * 4) + (Bp * FE * 4)),
    )(xp, shift, w)

    return out2d[:B].reshape(B, F, E)


if __name__ == "__main__":
    # Module config (small, consistent with FeaturesEmbedding.__init__).
    field_dims = (3, 5, 7, 9)            # sum = 24 rows in the embedding table
    embed_dim = 32
    batch = 16
    num_fields = len(field_dims)
    vocab = int(sum(field_dims))

    # offsets = (0, cumsum(field_dims)[:-1])  -- same as the PyTorch module.
    offsets = jnp.asarray(
        np.array((0, *np.cumsum(field_dims)[:-1]), dtype=np.int32))

    # Deterministic parameter init: xavier_uniform_-style on the embedding weight.
    key = jax.random.PRNGKey(0)
    k_tbl, k_idx = jax.random.split(key)
    bound = float(np.sqrt(6.0 / (vocab + embed_dim)))
    table = jax.random.uniform(
        k_tbl, (vocab, embed_dim), dtype=jnp.float32, minval=-bound, maxval=bound)

    # Deterministic inputs: per-field category ids in [0, field_dims[f]).
    cols = []
    keys = jax.random.split(k_idx, num_fields)
    for f in range(num_fields):
        cols.append(jax.random.randint(
            keys[f], (batch,), 0, field_dims[f], dtype=jnp.int32))
    x = jnp.stack(cols, axis=1)          # (batch, num_fields) int32

    out = features_embedding(x, offsets, table)   # TB auto-capped -> 2 grid steps
    out = jax.block_until_ready(out)

    # Reference check in plain JAX (same semantics as torch Embedding lookup).
    ref = jnp.take(table, x + offsets[None, :], axis=0)
    assert out.shape == (batch, num_fields, embed_dim)
    np.testing.assert_allclose(np.asarray(out), np.asarray(ref),
                               rtol=1e-6, atol=1e-6)

    print("KERNEL_OK")
</pallas_src>

<mosaic_0001>
module attributes {stable_mosaic.version = 11 : i64} {
  func.func @kernel(%arg0: i32, %arg1: memref<8x4xi32, #tpu.memory_space<vmem>>, %arg2: memref<1x4xi32, #tpu.memory_space<vmem>>, %arg3: memref<96x128xf32, #tpu.memory_space<vmem>>, %arg4: memref<8x128xf32, #tpu.memory_space<vmem>>) attributes {dimension_semantics = [#tpu.dimension_semantics<parallel>], iteration_bounds = array<i64: 2>, scalar_prefetch = 0 : i64, scratch_operands = 0 : i64, tpu.core_type = #tpu.core_type<tc>, window_params = [{transform_indices = @transform_0, window_bounds = array<i64: 8, 4>}, {pipeline_mode = #tpu.pipeline_mode<synchronous>, transform_indices = @transform_1, window_bounds = array<i64: 1, 4>}, {pipeline_mode = #tpu.pipeline_mode<synchronous>, transform_indices = @transform_2, window_bounds = array<i64: 96, 128>}, {transform_indices = @transform_3, window_bounds = array<i64: 8, 128>}]} {
    %c0 = arith.constant 0 : index
    %c0_0 = arith.constant 0 : index
    %0 = vector.load %arg1[%c0, %c0_0] : memref<8x4xi32, #tpu.memory_space<vmem>>, vector<8x4xi32>
    %c0_1 = arith.constant 0 : index
    %c0_2 = arith.constant 0 : index
    %1 = vector.load %arg2[%c0_1, %c0_2] : memref<1x4xi32, #tpu.memory_space<vmem>>, vector<1x4xi32>
    %2 = vector.broadcast %1 : vector<1x4xi32> to vector<8x4xi32>
    %3 = arith.addi %0, %2 : vector<8x4xi32>
    %4 = tpu.iota {dimensions = array<i32: 1>} : vector<8x96xi32>
    %5 = vector.extract_strided_slice %3 {offsets = [0, 0], sizes = [8, 1], strides = [1, 1]} : vector<8x4xi32> to vector<8x1xi32>
    %6 = vector.broadcast %5 : vector<8x1xi32> to vector<8x96xi32>
    %7 = arith.cmpi eq, %4, %6 : vector<8x96xi32>
    %8 = vector.extract_strided_slice %3 {offsets = [0, 1], sizes = [8, 1], strides = [1, 1]} : vector<8x4xi32> to vector<8x1xi32>
    %9 = vector.broadcast %8 : vector<8x1xi32> to vector<8x96xi32>
    %10 = arith.cmpi eq, %4, %9 : vector<8x96xi32>
    %11 = arith.ori %7, %10 : vector<8x96xi1>
    %12 = vector.extract_strided_slice %3 {offsets = [0, 2], sizes = [8, 1], strides = [1, 1]} : vector<8x4xi32> to vector<8x1xi32>
    %13 = vector.broadcast %12 : vector<8x1xi32> to vector<8x96xi32>
    %14 = arith.cmpi eq, %4, %13 : vector<8x96xi32>
    %15 = arith.ori %11, %14 : vector<8x96xi1>
    %16 = vector.extract_strided_slice %3 {offsets = [0, 3], sizes = [8, 1], strides = [1, 1]} : vector<8x4xi32> to vector<8x1xi32>
    %17 = vector.broadcast %16 : vector<8x1xi32> to vector<8x96xi32>
    %18 = arith.cmpi eq, %4, %17 : vector<8x96xi32>
    %19 = arith.ori %15, %18 : vector<8x96xi1>
    %20 = arith.extui %19 : vector<8x96xi1> to vector<8x96xi32>
    %21 = arith.sitofp %20 : vector<8x96xi32> to vector<8x96xf32>
    %c0_3 = arith.constant 0 : index
    %c0_4 = arith.constant 0 : index
    %22 = vector.load %arg3[%c0_3, %c0_4] : memref<96x128xf32, #tpu.memory_space<vmem>>, vector<96x128xf32>
    %cst = arith.constant dense<0.000000e+00> : vector<8x128xf32>
    %23 = tpu.matmul %21, %22, %cst {dimension_numbers = #tpu.dot_dimension_numbers<[1], [0], [0], [1], [0, 0, 1, 1], [], []>, precision = #tpu.contract_precision<fp32>} : vector<8x96xf32>, vector<96x128xf32>, vector<8x128xf32> -> vector<8x128xf32>
    %c0_5 = arith.constant 0 : index
    %c0_6 = arith.constant 0 : index
    %24 = vector.load %arg4[%c0_5, %c0_6] : memref<8x128xf32, #tpu.memory_space<vmem>>, vector<8x128xf32>
    tpu.vector_store %arg4[%c0_5, %c0_6], %23 {strides = array<i32>} : memref<8x128xf32, #tpu.memory_space<vmem>>, vector<8x128xf32>,
    return
  }
  func.func @transform_0(%arg0: i32) -> (i32, i32) {
    %c0_i32 = arith.constant 0 : i32
    %c0_i32_0 = arith.constant 0 : i32
    return %arg0, %c0_i32 : i32, i32
  }
  func.func @transform_1(%arg0: i32) -> (i32, i32) {
    %c0_i32 = arith.constant 0 : i32
    %c0_i32_0 = arith.constant 0 : i32
    %c0_i32_1 = arith.constant 0 : i32
    return %c0_i32, %c0_i32_0 : i32, i32
  }
  func.func @transform_2(%arg0: i32) -> (i32, i32) {
    %c0_i32 = arith.constant 0 : i32
    %c0_i32_0 = arith.constant 0 : i32
    %c0_i32_1 = arith.constant 0 : i32
    return %c0_i32, %c0_i32_0 : i32, i32
  }
  func.func @transform_3(%arg0: i32) -> (i32, i32) {
    %c0_i32 = arith.constant 0 : i32
    %c0_i32_0 = arith.constant 0 : i32
    return %arg0, %c0_i32 : i32, i32
  }
}

</mosaic_0001>

<bundles_post_ra>
// kernel: tpu_custom_call.1
= control target key start
LH: loop header
LB: loop body
LE: loop exit
PB: predicated region body
PF: predicated region fallthrough
CT: control target
= control target key end

     0   :  { %8 = vsyncpa [#allocation3], 0  ;;  %s1729_s0 = inlined_call_operand.vmem [shape: s32[16,4], index: 0, kind: input, shape index: {}]   ;;  %s1730_s1 = inlined_call_operand.vmem [shape: s32[1,4], index: 1, kind: input, shape index: {}]   ;;  %s1731_s2 = inlined_call_operand.hbm [shape: f32[96,128], index: 2, kind: input, shape index: {}]   ;;  %s1732_s3 = inlined_call_operand.hbm [shape: f32[16,128], index: 3, kind: output, shape index: {}]  }
   0x1   :  { %9 = vsyncpa [#allocation4], 0 }
   0x2   :  { %11 = vsyncpa [#allocation4 + $0x1], 0  ;;  %s1344_s12 = smov 0   ;;  %s1346_s13 = smov 0  }
   0x3   :  { %s1348_s14 = smov 0   ;;  %s1350_s15 = smov 0  }
   0x4 LB: > { %s1365_s16 = sadd.s32 4294967295, %s1312_s15   ;;  %s902_s17 = sadd.s32 4294967294, %s1312_s15   ;;  %s1312_s15 = sphi %s1350_s15, %s1740_s15   ;;  %s1308_s14 = sphi %s1348_s14, %s1739_s14   ;;  %s1304_s13 = sphi %s1346_s13, %s1738_s13   ;;  %s1300_s12 = sphi %s1344_s12, %s1737_s12  }
   0x5   : > { %s1369_s18 = sadd.s32 1, %s1312_s15   ;;  %s92_s19 = sadd.s32 1, %s1308_s14 }
   0x6   : > { %s89_s20 = ssub.s32 %s1312_s15, %s1369_s18  ;;  %p102_p0 = scmp.ne.s32.totalorder %s1308_s14, %s1304_s13 }
   0x7   : > { %p90_p1 = scmp.eq.s32.totalorder %s89_s20, 0  ;;  %p103_p2 = scmp.eq.s32.totalorder %s1365_s16, 1 }
   0x8   : > { %p108_p3 = scmp.ne.s32.totalorder %s1304_s13, %s1300_s12  ;;  %p109_p4 = scmp.eq.s32.totalorder %s902_s17, 1 }
   0x9   : > { %s1380_s21 = scalar_select %p90_p1, %s1308_s14, %s92_s19  }
   0xa   : > { %p1382_p5 = por %p103_p2, %p102_p0  ;;  %p1386_p6 = por %p109_p4, %p108_p3 }
   0xb   : > { %p903_p7 = scmp.ge.s32.totalorder %s1312_s15, 1  ;;  %p116_p8 = scmp.lt.s32.totalorder %s1312_s15, 3 }
   0xc   : > { %s1734_s23 = scalar_select %p1386_p6, 1, 0 }
   0xd   : > { %p1173_p9 = scmp.eq.s32.totalorder %s1365_s16, 0  ;;  %p1393_p10 = pnand %p903_p7, %p116_p8 }
   0xe   : > { %s1314_s25 = smov [#allocation2]  }
   0xf   : > { %s131_s26 = sshll.u32 %s1314_s25, 4  ;;  %p1165_p11 = pneg %p1393_p10  ;;  %s132_s26 = int_to_ptr.vmem [resolvable:$true] %s131_s26 }
  0x10   : > { %s1233_s27 = scalar_lea.vmem %s132_s26, 1536  ;;  %p1241_p3 = scmp.lt.s32.totalorder %s132_s26, %s132_s26 }
  0x11   : > { %p1166_p12 = pnand %p1173_p9, %p1165_p11  ;;  %p1234_p0 = scmp.ne.s32.totalorder %s132_s26, %s1233_s27 }
  0x12   : > { %p1242_p4 = scmp.lt.s32.totalorder %s1233_s27, %s1233_s27 }
  0x13   : > { %p1224_p13 = pneg %p1166_p12 }
  0x14   : > { %p1243_p6 = por %p1242_p4, %p1241_p3 }
  0x15   : > { %p1236_p1 = pnand %p1234_p0, %p1224_p13 }
  0x17   : > { %p1237_p2 = pneg %p1236_p1 }
  0x19   : > { %p1244_p7 = pnand %p1243_p6, %p1237_p2 }
  0x1b   : > { %1247 = shalt.err (!%p1244_p7)
}
  0x1c   : > { %s1315_s28 = smov 128   ;;  %s1316_s29 = smov 8  }
  0x1d   : > { %1168 = dma.hbm_to_vmem [thread:$0]  (!%p1166_p12), %s1731_s2, 1536, %s132_s26, [#allocation3], %s1315_s28, %s1315_s28, %s1316_s29  }
  0x1e   : > { %154 = sbr.rel (%p1393_p10) target bundleno = 448 (0x1c0), region = 32 }
  0x23   : > { %1291 = dma.done.wait (%p1173_p9), [#allocation3], 1536  }
  0x24   : > { %1293 = vsyncadd (%p1173_p9), [#allocation3], 4294965760  ;;  %p177_p8 = scmp.lt.s32.totalorder %s1365_s16, 1  ;;  %v1317_v0 = vmov 0   ;;  %v1318_v1 = vmov 2   ;;  %v1319_v2 = vmov 0.0  }
  0x25   : > { %1217 = vset.pattern.permute.xlu0 %v1317_v0  ;;  %1219 = vset.pattern.permute.xlu1 %v1318_v1  ;;  %v910_v4 = vld [vmem:[%s1730_s1] ss:$0 sm:$0xff]  ;;  %v222_v5 = vld [vmem:[#allocation2 + $0x58] sm:$0xff]  ;;  %v221_v8 = vld [vmem:[#allocation2 + $0x50] sm:$0xff]  ;;  %v1320_v32 = vmov 1   ;;  %v1321_v33 = vmov 3  }
  0x26   : > { %s178_s5 = scalar_select %p177_p8, %s1365_s16, 1  ;;  %1024 = vmatprep.subr.mxu1 %v1319_v2  ;;  %997 = vmatprep.subr.mxu0 %v1319_v2  ;;  %v1420_v7 = vand.u32 4294901760, %v222_v5  ;;  %v220_v9 = vld [vmem:[#allocation2 + $0x48] sm:$0xff]  ;;  %v219_v10 = vld [vmem:[#allocation2 + $0x40] sm:$0xff]  ;;  %v1422_v11 = vand.u32 4294901760, %v221_v8  ;;  %v218_v14 = vld [vmem:[#allocation2 + $0x38] sm:$0xff] }
  0x27   : > { %v1424_v12 = vand.u32 4294901760, %v220_v9  ;;  %v1426_v13 = vand.u32 4294901760, %v219_v10  ;;  %v217_v15 = vld [vmem:[#allocation2 + $0x30] sm:$0xff]  ;;  %v216_v16 = vld [vmem:[#allocation2 + $0x28] sm:$0xff]  ;;  %v1431_v18 = vand.u32 4294901760, %v218_v14  ;;  %v215_v21 = vld [vmem:[#allocation2 + $0x20] sm:$0xff] }
  0x28   : > { %s909_s6 = sshll.u32 %s178_s5, 3  ;;  %v1429_v17 = vsub.f32 %v222_v5, %v1420_v7  ;;  %v1433_v19 = vand.u32 4294901760, %v217_v15  ;;  %v1435_v20 = vand.u32 4294901760, %v216_v16  ;;  %v1438_v22 = vsub.f32 %v221_v8, %v1422_v11  ;;  %998 = vmatpush3.msra.mxu0 %v1420_v7  ;;  %v214_v40 = vld [vmem:[#allocation2 + $0x18] sm:$0xff]  ;;  %v213_v44 = vld [vmem:[#allocation2 + $0x10] sm:$0xff]  ;;  %v212_v45 = vld [vmem:[#allocation2 + $0x8] sm:$0xff] }
  0x29   : > { %s180_s9 = scalar_lea.vmem %s1729_s0, %s909_s6  ;;  %v1441_v23 = vsub.f32 %v220_v9, %v1424_v12  ;;  %v1444_v24 = vsub.f32 %v219_v10, %v1426_v13  ;;  %v1447_v25 = vand.u32 4294901760, %v215_v21  ;;  %v1451_v27 = vsub.f32 %v218_v14, %v1431_v18  ;;  %999 = vmatprep.subr.mxu0 %v1319_v2  ;;  %v211_v47 = vld [vmem:[#allocation2] sm:$0xff]  ;;  %s174_s17 = sand.u32 1, %s1304_s13  }
  0x2a   : > { %v181_v3 = vld [vmem:[%s180_s9] sm:$0xff]  ;;  %v325_v26 = vand.u32 4294901760, %v1429_v17  ;;  %v1455_v28 = vsub.f32 %v217_v15, %v1433_v19  ;;  %v332_v29 = vand.u32 4294901760, %v1438_v22  ;;  %1000 = vmatpush3.msra.mxu0 %v1422_v11  ;;  %v1467_v36 = vsub.f32 %v216_v16, %v1435_v20  ;;  %s908_s19 = sshll.u32 %s174_s17, 3  ;;  %s916_s20 = sshll.u32 %s1365_s16, 7 }
  0x2b   : > { %v187_v6 = vadd.s32 %v910_v4, %v181_v3  ;;  %v339_v30 = vand.u32 4294901760, %v1441_v23  ;;  %v346_v31 = vand.u32 4294901760, %v1444_v24  ;;  %v353_v35 = vand.u32 4294901760, %v1451_v27  ;;  %1001 = vmatprep.subr.mxu0 %v1319_v2  ;;  %s176_s24 = scalar_lea.vmem [#allocation5], %s908_s19  ;;  %s829_s28 = scalar_lea.hbm %s1732_s3, %s916_s20 }
  0x2c   : > { %v326_v34 = vsub.f32 %v1429_v17, %v325_v26  ;;  %v333_v37 = vsub.f32 %v1438_v22, %v332_v29  ;;  %v1476_v39 = vsub.f32 %v215_v21, %v1447_v25  ;;  %v360_v43 = vand.u32 4294901760, %v1455_v28  ;;  %1002 = vmatpush3.msra.mxu0 %v1424_v12  ;;  %s831_s25 = sshll.u32 %s176_s24, 4  ;;  %s818_s29 = scalar_lea.sflag [#allocation4], %s174_s17  ;;  %s832_s25 = int_to_ptr.vmem [resolvable:$true] %s831_s25 }
  0x2d   : > { %191 = vperm.xlu0 %1217, %v187_v6   ;;  %200 = vperm.xlu1 %1219, %v187_v6   ;;  %v340_v38 = vsub.f32 %v1441_v23, %v339_v30  ;;  %v347_v42 = vsub.f32 %v1444_v24, %v346_v31  ;;  %v354_v49 = vsub.f32 %v1451_v27, %v353_v35  ;;  %v367_v50 = vand.u32 4294901760, %v1467_v36  ;;  %s1248_s30 = scalar_lea.vmem %s832_s25, 128  ;;  %s1323_s4 = smov [#allocation5]  }
  0x2e   : > { %v327_v41 = vand.u32 4294901760, %v326_v34  ;;  %v334_v46 = vand.u32 4294901760, %v333_v37  ;;  %1003 = vmatprep.subr.mxu0 %v1319_v2  ;;  %v1489_v51 = vand.u32 4294901760, %v214_v40  ;;  %v374_v52 = vand.u32 4294901760, %v1476_v39  ;;  %p1249_p6 = scmp.ne.s32.totalorder %s832_s25, %s1248_s30  ;;  %s1252_s5 = sshll.u32 %s1323_s4, 4  ;;  %s1253_s5 = int_to_ptr.vmem [resolvable:$false] %s1252_s5 }
  0x2f   : > { %v341_v48 = vand.u32 4294901760, %v340_v38  ;;  %1004 = vmatpush3.msra.mxu0 %v1426_v13  ;;  %v1494_v53 = vand.u32 4294901760, %v213_v44  ;;  %v1496_v54 = vand.u32 4294901760, %v212_v45  ;;  %v348_v55 = vand.u32 4294901760, %v347_v42  ;;  %s1254_s16 = scalar_lea.vmem %s1253_s5, 256  ;;  %p1255_p11 = scmp.lt.s32.totalorder %s832_s25, %s1253_s5 }
  0x30   : > { %1025 = vmatpush3.msra.mxu1 %v327_v41  ;;  %v361_v56 = vsub.f32 %v1455_v28, %v360_v43  ;;  %1005 = vmatprep.subr.mxu0 %v1319_v2  ;;  %v1503_v57 = vsub.f32 %v214_v40, %v1489_v51  ;;  %v1505_v58 = vand.u32 4294901760, %v211_v47  ;;  %v355_v60 = vand.u32 4294901760, %v354_v49  ;;  %p1250_p9 = pnand %p1249_p6, %p1382_p5  ;;  %p1256_p12 = scmp.lt.s32.totalorder %s1254_s16, %s1248_s30 }
  0x31   : > { %1218 = vset.pattern.permute.xlu0 %v1320_v32  ;;  %1220 = vset.pattern.permute.xlu1 %v1321_v33  ;;  %v1510_v59 = vsub.f32 %v213_v44, %v1494_v53  ;;  %v368_v61 = vsub.f32 %v1467_v36, %v367_v50  ;;  %v1518_v63 = vsub.f32 %v212_v45, %v1496_v54  ;;  %vm1322_vm0 = vmmov 0  }
  0x32   : > { %195 = vperm.xlu0 %1218, %v187_v6   ;;  %205 = vperm.xlu1 %1220, %v187_v6   ;;  %v381_v62 = vand.u32 4294901760, %v1503_v57  ;;  %v362_v0 = vand.u32 4294901760, %v361_v56  ;;  %v375_v1 = vsub.f32 %v1476_v39, %v374_v52  ;;  %v1528_v4 = vsub.f32 %v211_v47, %v1505_v58  ;;  %p1251_p10 = pneg %p1250_p9  ;;  %p1257_p13 = por %p1256_p12, %p1255_p11 }
  0x33   : > { %1026 = vmatprep.subr.mxu1 %v1319_v2  ;;  %1006 = vmatpush3.msra.mxu0 %v1431_v18  ;;  %v388_v3 = vand.u32 4294901760, %v1510_v59  ;;  %v369_v5 = vand.u32 4294901760, %v368_v61  ;;  %v395_v8 = vand.u32 4294901760, %v1518_v63  ;;  %v188_v38 = vlaneseq }
  0x34   : > { %1027 = vmatpush3.msra.mxu1 %v334_v46  ;;  %1007 = vmatprep.subr.mxu0 %v1319_v2  ;;  %v382_v6 = vsub.f32 %v1503_v57, %v381_v62  ;;  %v376_v9 = vand.u32 4294901760, %v375_v1  ;;  %v402_v14 = vand.u32 4294901760, %v1528_v4  ;;  %vm223_vm7 = vcmask 785408   ;;  %p1258_p0 = pnand %p1257_p13, %p1251_p10 }
  0x35   : > { %1028 = vmatprep.subr.mxu1 %v1319_v2  ;;  %1008 = vmatpush3.msra.mxu0 %v1433_v19  ;;  %v389_v10 = vsub.f32 %v1510_v59, %v388_v3  ;;  %v396_v16 = vsub.f32 %v1518_v63, %v395_v8  ;;  %v189_v42 = vand.u32 127, %v188_v38 }
  0x36   : > { %1029 = vmatpush3.msra.mxu1 %v341_v48  ;;  %1009 = vmatprep.subr.mxu0 %v1319_v2  ;;  %v383_v15 = vand.u32 4294901760, %v382_v6  ;;  %v403_v32 = vsub.f32 %v1528_v4, %v402_v14 }
  0x37   : > { %1030 = vmatprep.subr.mxu1 %v1319_v2  ;;  %1010 = vmatpush3.msra.mxu0 %v1435_v20  ;;  %v390_v21 = vand.u32 4294901760, %v389_v10  ;;  %v397_v34 = vand.u32 4294901760, %v396_v16 }
  0x38   : > { %1031 = vmatpush3.msra.mxu1 %v348_v55  ;;  %1011 = vmatprep.subr.mxu0 %v1319_v2  ;;  %v404_v37 = vand.u32 4294901760, %v403_v32 }
  0x39   : > { %1032 = vmatprep.subr.mxu1 %v1319_v2  ;;  %1012 = vmatpush3.msra.mxu0 %v1447_v25 }
  0x3a   : > { %1033 = vmatpush3.msra.mxu1 %v355_v60  ;;  %1048 = vmatprep.mubr.msk.f32.mxu1 %vm1322_vm0, %v1319_v2 }
  0x3b   : > { %1034 = vmatprep.subr.mxu1 %v1319_v2  ;;  %1013 = vmatprep.subr.mxu0 %v1319_v2 }
  0x3c   : > { %1035 = vmatpush3.msra.mxu1 %v362_v0  ;;  %1014 = vmatpush3.msra.mxu0 %v1489_v51 }
  0x3d   : > { %1036 = vmatprep.subr.mxu1 %v1319_v2  ;;  %1015 = vmatprep.subr.mxu0 %v1319_v2 }
  0x3e   : > { %1037 = vmatpush3.msra.mxu1 %v369_v5  ;;  %1016 = vmatpush3.msra.mxu0 %v1494_v53 }
  0x3f   : > { %1038 = vmatprep.subr.mxu1 %v1319_v2  ;;  %1017 = vmatprep.subr.mxu0 %v1319_v2 }
  0x40   : > { %1039 = vmatpush3.msra.mxu1 %v376_v9  ;;  %1018 = vmatpush3.msra.mxu0 %v1496_v54 }
  0x41   : > { %1040 = vmatprep.subr.mxu1 %v1319_v2  ;;  %1019 = vmatprep.subr.mxu0 %v1319_v2 }
  0x42   : > { %1041 = vmatpush3.msra.mxu1 %v383_v15  ;;  %1020 = vmatpush3.msra.mxu0 %v1505_v58 }
  0x43   : > { %1042 = vmatprep.subr.mxu1 %v1319_v2  ;;  %1021 = vmatprep.mubr.msk.f32.mxu0 %vm1322_vm0, %v1319_v2 }
  0x44   : > { %1043 = vmatpush3.msra.mxu1 %v390_v21  ;;  %1051 = vmatprep.subr.mxu0 %v1319_v2 }
  0x45   : > { %1044 = vmatprep.subr.mxu1 %v1319_v2  ;;  %1221 = vset.pattern.permute.xlu0 %v1321_v33 }
  0x46   : > { %1045 = vmatpush3.msra.mxu1 %v397_v34 }
  0x47   : > { %1046 = vmatprep.subr.mxu1 %v1319_v2 }
  0x48   : > { %1047 = vmatpush3.msra.mxu1 %v404_v37 }
  0x49   : > { %1078 = vmatprep.subr.mxu1 %v1319_v2 }
  0xa8   : > { %v192_v40 = vpop.permute.xlu0 %191  ;;  %v201_v41 = vpop.permute.xlu1 %200 }
  0xa9   : > { %vm193_vm1 = vcmp.eq.s32.totalorder %v189_v42, %v192_v40  ;;  %vm202_vm4 = vcmp.eq.s32.totalorder %v189_v42, %v201_v41 }
  0xad   : > { %v196_v44 = vpop.permute.xlu0 %195  ;;  %v206_v45 = vpop.permute.xlu1 %205 }
  0xae   : > { %vm197_vm2 = vcmp.eq.s32.totalorder %v189_v42, %v196_v44  ;;  %vm207_vm3 = vcmp.eq.s32.totalorder %v189_v42, %v206_v45 }
  0xaf   : > { %vm198_vm5 = vmor %vm193_vm1, %vm197_vm2 }
  0xb0   : > { %vm203_vm6 = vmor %vm198_vm5, %vm202_vm4 }
  0xb1   : > { %vm208_vm8 = vmor %vm203_vm6, %vm207_vm3 }
  0xb2   : > { %v1571_v46 = vsel %vm208_vm8, 1.0, %v1319_v2 }
  0xb3   : > { %v225_v33 = vsel %vm223_vm7, %v1571_v46, 0  ;;  %1049 = vmatmul.mubr.msk.f32.vlgmr.msra.gmra.mxu1 %vm223_vm7, %v1571_v46 }
  0xb4   : > { %v305_v47 = vsub.f32 %v225_v33, %v225_v33  ;;  %1079 = vmatpush3.msra.mxu1 %v1420_v7  ;;  %1102 = vmatprep.mubr.msk.f32.mxu1 %vm1322_vm0, %v1319_v2 }
  0xb5   : > { %1080 = vmatprep.subr.mxu1 %v1319_v2 }
  0xb6   : > { %1081 = vmatpush3.msra.mxu1 %v1422_v11  ;;  %v306_v48 = vand.u32 4294901760, %v305_v47 }
  0xb7   : > { %1082 = vmatprep.subr.mxu1 %v1319_v2 }
  0xb8   : > { %1083 = vmatpush3.msra.mxu1 %v1424_v12  ;;  %v307_v49 = vsub.f32 %v305_v47, %v306_v48 }
  0xb9   : > { %1084 = vmatprep.subr.mxu1 %v1319_v2 }
  0xba   : > { %1085 = vmatpush3.msra.mxu1 %v1426_v13  ;;  %v308_v55 = vand.u32 4294901760, %v307_v49 }
  0xbb   : > { %1086 = vmatprep.subr.mxu1 %v1319_v2 }
  0xbc   : > { %1087 = vmatpush3.msra.mxu1 %v1431_v18  ;;  %1022 = vmatmul.mubr.f32.vlgmr.msra.gmra.mxu0 %v308_v55 }
  0xbd   : > { %1052 = vmatpush3.msra.mxu0 %v1429_v17  ;;  %1088 = vmatprep.subr.mxu1 %v1319_v2 }
  0xbe   : > { %1053 = vmatprep.subr.mxu0 %v1319_v2  ;;  %1089 = vmatpush3.msra.mxu1 %v1433_v19 }
  0xbf   : > { %1054 = vmatpush3.msra.mxu0 %v1438_v22  ;;  %1090 = vmatprep.subr.mxu1 %v1319_v2 }
  0xc0   : > { %1055 = vmatprep.subr.mxu0 %v1319_v2  ;;  %1091 = vmatpush3.msra.mxu1 %v1435_v20 }
  0xc1   : > { %1056 = vmatpush3.msra.mxu0 %v1441_v23  ;;  %1092 = vmatprep.subr.mxu1 %v1319_v2 }
  0xc2   : > { %1057 = vmatprep.subr.mxu0 %v1319_v2  ;;  %1093 = vmatpush3.msra.mxu1 %v1447_v25 }
  0xc3   : > { %1058 = vmatpush3.msra.mxu0 %v1444_v24  ;;  %1094 = vmatprep.subr.mxu1 %v1319_v2 }
  0xc4   : > { %1059 = vmatprep.subr.mxu0 %v1319_v2  ;;  %1095 = vmatpush3.msra.mxu1 %v1489_v51 }
  0xc5   : > { %1060 = vmatpush3.msra.mxu0 %v1451_v27  ;;  %1096 = vmatprep.subr.mxu1 %v1319_v2 }
  0xc6   : > { %1061 = vmatprep.subr.mxu0 %v1319_v2  ;;  %1097 = vmatpush3.msra.mxu1 %v1494_v53 }
  0xc7   : > { %1062 = vmatpush3.msra.mxu0 %v1455_v28  ;;  %1098 = vmatprep.subr.mxu1 %v1319_v2 }
  0xc8   : > { %1063 = vmatprep.subr.mxu0 %v1319_v2  ;;  %1099 = vmatpush3.msra.mxu1 %v1496_v54 }
  0xc9   : > { %1064 = vmatpush3.msra.mxu0 %v1467_v36  ;;  %1100 = vmatprep.subr.mxu1 %v1319_v2 }
  0xca   : > { %1065 = vmatprep.subr.mxu0 %v1319_v2  ;;  %1101 = vmatpush3.msra.mxu1 %v1505_v58 }
  0xcb   : > { %1066 = vmatpush3.msra.mxu0 %v1476_v39  ;;  %1103 = vmatmul.mubr.f32.vlgmr.msra.gmra.mxu1 %v306_v48 }
  0xcc   : > { %1132 = vmatprep.subr.mxu1 %v1319_v2  ;;  %1067 = vmatprep.subr.mxu0 %v1319_v2 }
  0xcd   : > { %1133 = vmatpush3.msra.mxu1 %v1420_v7  ;;  %1068 = vmatpush3.msra.mxu0 %v1503_v57 }
  0xce   : > { %1134 = vmatprep.subr.mxu1 %v1319_v2  ;;  %1069 = vmatprep.subr.mxu0 %v1319_v2 }
  0xcf   : > { %1135 = vmatpush3.msra.mxu1 %v1422_v11  ;;  %1070 = vmatpush3.msra.mxu0 %v1510_v59 }
  0xd0   : > { %1136 = vmatprep.subr.mxu1 %v1319_v2  ;;  %1071 = vmatprep.subr.mxu0 %v1319_v2 }
  0xd1   : > { %1137 = vmatpush3.msra.mxu1 %v1424_v12  ;;  %1072 = vmatpush3.msra.mxu0 %v1518_v63 }
  0xd2   : > { %1138 = vmatprep.subr.mxu1 %v1319_v2  ;;  %1073 = vmatprep.subr.mxu0 %v1319_v2 }
  0xd3   : > { %1139 = vmatpush3.msra.mxu1 %v1426_v13  ;;  %1074 = vmatpush3.msra.mxu0 %v1528_v4 }
  0xd4   : > { %1075 = vmatprep.mubr.msk.f32.mxu0 %vm1322_vm0, %v1319_v2  ;;  %1140 = vmatprep.subr.mxu1 %v1319_v2 }
  0xd5   : > { %1076 = vmatmul.mubr.f32.vlgmr.msra.gmra.mxu0 %v305_v47  ;;  %1105 = vmatprep.subr.mxu0 %v1319_v2 }
  0xd6   : > { %1141 = vmatpush3.msra.mxu1 %v1431_v18  ;;  %1106 = vmatpush3.msra.mxu0 %v325_v26 }
  0xd7   : > { %1142 = vmatprep.subr.mxu1 %v1319_v2  ;;  %1107 = vmatprep.subr.mxu0 %v1319_v2 }
  0xd8   : > { %1143 = vmatpush3.msra.mxu1 %v1433_v19  ;;  %1108 = vmatpush3.msra.mxu0 %v332_v29 }
  0xd9   : > { %1144 = vmatprep.subr.mxu1 %v1319_v2  ;;  %1109 = vmatprep.subr.mxu0 %v1319_v2 }
  0xda   : > { %1145 = vmatpush3.msra.mxu1 %v1435_v20  ;;  %1110 = vmatpush3.msra.mxu0 %v339_v30 }
  0xdb   : > { %1146 = vmatprep.subr.mxu1 %v1319_v2  ;;  %1111 = vmatprep.subr.mxu0 %v1319_v2 }
  0xdc   : > { %1147 = vmatpush3.msra.mxu1 %v1447_v25  ;;  %1112 = vmatpush3.msra.mxu0 %v346_v31 }
  0xdd   : > { %1148 = vmatprep.subr.mxu1 %v1319_v2  ;;  %1113 = vmatprep.subr.mxu0 %v1319_v2 }
  0xde   : > { %1149 = vmatpush3.msra.mxu1 %v1489_v51  ;;  %1114 = vmatpush3.msra.mxu0 %v353_v35 }
  0xdf   : > { %1150 = vmatprep.subr.mxu1 %v1319_v2  ;;  %1115 = vmatprep.subr.mxu0 %v1319_v2 }
  0xe0   : > { %1151 = vmatpush3.msra.mxu1 %v1494_v53  ;;  %1116 = vmatpush3.msra.mxu0 %v360_v43 }
  0xe1   : > { %1152 = vmatprep.subr.mxu1 %v1319_v2  ;;  %1117 = vmatprep.subr.mxu0 %v1319_v2 }
  0xe2   : > { %1153 = vmatpush3.msra.mxu1 %v1496_v54  ;;  %1118 = vmatpush3.msra.mxu0 %v367_v50 }
  0xe3   : > { %1154 = vmatprep.subr.mxu1 %v1319_v2  ;;  %1119 = vmatprep.subr.mxu0 %v1319_v2 }
  0xe4   : > { %1155 = vmatpush3.msra.mxu1 %v1505_v58  ;;  %1156 = vmatprep.mubr.msk.f32.mxu1 %vm1322_vm0, %v1319_v2 }
  0xe5   : > { %1120 = vmatpush3.msra.mxu0 %v374_v52  ;;  %1157 = vmatmul.mubr.msk.f32.vlgmr.msra.gmra.mxu1 %vm223_vm7, %v1571_v46 }
  0xe6   : > { %1121 = vmatprep.subr.mxu0 %v1319_v2  ;;  %1129 = vmatprep.mubr.msk.f32.mxu0 %vm1322_vm0, %v1319_v2 }
  0xe7   : > { %1122 = vmatpush3.msra.mxu0 %v381_v62 }
  0xe8   : > { %1123 = vmatprep.subr.mxu0 %v1319_v2 }
  0xe9   : > { %1124 = vmatpush3.msra.mxu0 %v388_v3 }
  0xea   : > { %1125 = vmatprep.subr.mxu0 %v1319_v2 }
  0xeb   : > { %1126 = vmatpush3.msra.mxu0 %v395_v8 }
  0xec   : > { %1127 = vmatprep.subr.mxu0 %v1319_v2 }
  0xed   : > { %1128 = vmatpush3.msra.mxu0 %v402_v14 }
  0xee   : > { %1130 = vmatmul.mubr.msk.f32.vlgmr.msra.gmra.mxu0 %vm223_vm7, %v1571_v46 }
 0x173   : > { %v441_v7 = vpop.f32.mrf.mxu1 }
 0x175   : > { %v1050_v11 = vpop.f32.mrf.mxu1 }
 0x17c   : > { %v310_v12 = vpop.f32.mrf.mxu0 }
 0x17d   : > { %v442_v23 = vadd.f32 %v441_v7, %v310_v12 }
 0x17e   : > { %v1023_v13 = vpop.f32.mrf.mxu0 }
 0x18b   : > { %v622_v17 = vpop.f32.mrf.mxu1 }
 0x18d   : > { %v1104_v18 = vpop.f32.mrf.mxu1 }
 0x195   : > { %v537_v19 = vpop.f32.mrf.mxu0 }
 0x196   : > { %v538_v2 = vadd.f32 %v537_v19, %v442_v23 }
 0x197   : > { %v1077_v20 = vpop.f32.mrf.mxu0 }
 0x198   : > { %v623_v25 = vadd.f32 %v622_v17, %v538_v2 }
 0x1a5   : > { %v812_v22 = vpop.f32.mrf.mxu1 }
 0x1a7   : > { %v1158_v24 = vpop.f32.mrf.mxu1 }
 0x1ae   : > { %v729_v26 = vpop.f32.mrf.mxu0 }
 0x1af   : > { %v730_v27 = vadd.f32 %v729_v26, %v623_v25 }
 0x1b0   : > { %v1131_v28 = vpop.f32.mrf.mxu0 }
 0x1b1   : > { %v813_v29 = vadd.f32 %v812_v22, %v730_v27 }
 0x1b3   : > { %816 = vst [vmem:[%s176_s24] sm:$0xff] %v813_v29 }
 0x1b4   : > { %1261 = shalt.err (!%p1258_p0)
}
 0x1b5   : > { %s1262_s6 = scalar_lea.hbm %s829_s28, 128  ;;  %s1266_s9 = scalar_lea.hbm %s1732_s3, 256 }
 0x1b6   : > { %p1263_p1 = scmp.ne.s32.totalorder %s829_s28, %s1262_s6  ;;  %p1267_p4 = scmp.lt.s32.totalorder %s829_s28, %s1732_s3 }
 0x1b7   : > { %p1268_p7 = scmp.lt.s32.totalorder %s1266_s9, %s1262_s6 }
 0x1b8   : > { %p1264_p2 = pnand %p1263_p1, %p1382_p5 }
 0x1b9   : > { %p1269_p8 = por %p1268_p7, %p1267_p4 }
 0x1ba   : > { %p1265_p3 = pneg %p1264_p2 }
 0x1bc   : > { %p1270_p6 = pnand %p1269_p8, %p1265_p3 }
 0x1be   : > { %1273 = shalt.err (!%p1270_p6)
}
 0x1bf   : > { %1163 = dma.vmem_to_hbm [thread:$0]  (%p1382_p5), %s832_s25, 128, %s829_s28, %s818_s29  }
 0x1c0 PF: > { %p1175_p9 = scmp.ge.s32.totalorder %s1312_s15, 2  ;;  %s843_s17 = sand.u32 1, %s1300_s12  }
 0x1c1   : > { %p1736_p10 = scmp.ne.s32.totalorder %s1734_s23, 0  ;;  %s844_s19 = scalar_lea.sflag [#allocation4], %s843_s17 }
 0x1c3   : > { %p1170_p11 = pnand %p1175_p9, %p1736_p10 }
 0x1c5   : > { %p1171_p12 = pneg %p1170_p11 }
 0x1c7   : > { %1295 = dma.done.wait (%p1171_p12), %s844_s19, 128  }
 0x1c8   : > { %1297 = vsyncadd (%p1171_p12), %s844_s19, 4294967168  ;;  %p14_p13 = scmp.ge.s32.totalorder %s1369_s18, 4   ;;  %s1737_s12 = smov %s1304_s13 }
 0x1c9   : > { %s1738_s13 = smov %s1308_s14  ;;  %s1739_s14 = smov %s1380_s21 }
 0x1ca   : > { %s1740_s15 = smov %s1369_s18  ;;  %16 = sbr.rel (!%p14_p13) target bundleno = 4 (0x4), region = 72 }
 0x1cf   :  { %849 = vsyncpa [#allocation3], 1 }
 0x1d0   :  { %851 = vsyncpa [#allocation3 + $0x1], 1 }
 0x1d1   :  { %852 = vsyncpa [#allocation4], 1 }
 0x1d2   :  { %854 = vsyncpa [#allocation4 + $0x1], 1 }

</bundles_post_ra>
